<compile_context>
chip_gen: v7x
topology: tpu7x:2x2x1
jax: 0.10.0
libtpu: 0.0.40
codegen_flags: <defaults>
</compile_context>

<pallas_src>
import numpy as np

import jax
import jax.numpy as jnp
from jax import lax
from jax.experimental import pallas as pl
from jax.experimental.pallas import tpu as pltpu


# --------------------------------------------------------------------------------------
# Stage 1: AvgPool2d(5, stride=3) + conv0 (1x1, bias=False) + folded BN + ReLU
# --------------------------------------------------------------------------------------
def _pool_conv0_kernel(x_ref, p_ref, w0_ref, s0_ref, b0_ref, o_ref):
    """One image per grid step.

    x_ref : (1, HWP, Cin)  f32   flattened channels-last image (H*W zero-padded to HWP)
    p_ref : (OHW, HWP)     f32   constant pooling matrix (P @ flat(img) == avg_pool(img))
    w0_ref: (Cin, C0)      bf16  conv0 weight
    s0/b0 : (1, C0)        f32   folded BN scale / bias
    o_ref : (1, OHW, C0)   bf16  lane-dense (C0 = 128) output
    """
    pooled = jnp.dot(p_ref[...], x_ref[0], preferred_element_type=jnp.float32)      # (OHW, Cin)
    h = jnp.dot(pooled.astype(w0_ref.dtype), w0_ref[...],
                preferred_element_type=jnp.float32)                                  # (OHW, C0)
    h = jnp.maximum(h * s0_ref[0, :] + b0_ref[0, :], 0.0)                            # BN + ReLU (f32)
    o_ref[0] = h.astype(o_ref.dtype)


# --------------------------------------------------------------------------------------
# Stage 2: conv1 (5x5 'valid' == single K=5*5*128 contraction) + folded BN + ReLU
#          + adaptive_avg_pool((1,1)) (identity: conv1 output is already 1x1) + fc
# --------------------------------------------------------------------------------------
def _conv1_fc_kernel(f_ref, w1_ref, s1_ref, b1_ref, wfc_ref, bfc_ref, o_ref, acc_ref):
    """Grid = (N, C1 // TC1): batch parallel; conv1-Cout tiles are the (last) reduction axis
    of the fc contraction, accumulated into acc_ref (f32 VMEM scratch).

    f_ref  : (1, 1, KC)   bf16   im2col features for one image (KC = 5*5*128)
    w1_ref : (KC, TC1)    bf16   conv1 weight tile
    s1/b1  : (1, TC1)     f32    folded BN scale / bias tile
    wfc_ref: (TC1, NCP)   bf16   fc weight rows for this Cout tile (NCP = classes padded to 128)
    bfc_ref: (1, NCP)     f32    fc bias (zero padded)
    o_ref  : (1, 1, NCP)  f32
    acc_ref: (1, NCP)     f32    scratch accumulator
    """
    j = pl.program_id(1)

    @pl.when(j == 0)
    def _init():
        acc_ref[...] = jnp.zeros_like(acc_ref)

    h = jnp.dot(f_ref[0], w1_ref[...], preferred_element_type=jnp.float32)           # (1, TC1)
    h = jnp.maximum(h * s1_ref[0, :] + b1_ref[0, :], 0.0)                             # BN + ReLU (f32)
    # adaptive_avg_pool((1,1)) is the identity here: conv1 output spatial is exactly 1x1.
    acc_ref[...] += jnp.dot(h.astype(wfc_ref.dtype), wfc_ref[...],
                            preferred_element_type=jnp.float32)                       # (1, NCP)

    @pl.when(j == pl.num_programs(1) - 1)
    def _finalize():
        o_ref[0] = (acc_ref[...] + bfc_ref[0, :]).astype(o_ref.dtype)


# --------------------------------------------------------------------------------------
# Wrapper
# --------------------------------------------------------------------------------------
def _round_up(v, m):
    return ((v + m - 1) // m) * m


def _build_pool_matrix(Hin, Win, k, s, OH, OW, padded_cols):
    """Constant (OH*OW, padded_cols) matrix P so that P @ flatten(img) == AvgPool2d(k, s)(img)."""
    P = np.zeros((OH * OW, padded_cols), np.float32)
    inv = 1.0 / float(k * k)
    for oh in range(OH):
        for ow in range(OW):
            r = oh * OW + ow
            for kh in range(k):
                for kw in range(k):
                    P[r, (oh * s + kh) * Win + (ow * s + kw)] = inv
    return jnp.asarray(P)


def inception_aux_forward(x_nchw,
                          w0_oihw, gamma0, beta0, mean0, var0,
                          w1_oihw, gamma1, beta1, mean1, var1,
                          wfc, bfc, *, eps=1e-3):
    """InceptionAux forward (inference-mode BatchNorm folded into per-channel scale/bias)."""
    N, Cin, Hin, Win = x_nchw.shape
    C0 = w0_oihw.shape[0]                       # 128
    C1, C0w, K1, K1w = w1_oihw.shape            # 768, 128, 5, 5
    NC = wfc.shape[0]
    assert C0w == C0 and K1 == K1w

    PK, PS = 5, 3                               # AvgPool2d(kernel_size=5, stride=3)
    OH = (Hin - PK) // PS + 1
    OW = (Win - PK) // PS + 1
    # Canonical InceptionAux geometry: pooled map is K1 x K1, so the 'valid' 5x5 conv1 output
    # is exactly 1x1 and AdaptiveAvgPool2d((1,1)) is the identity.
    assert OH == K1 and OW == K1, "expected pooled spatial == conv1 kernel (e.g. 17x17 input)"
    # TODO(synk): general AdaptiveAvgPool2d (conv1 output larger than 1x1) not implemented.

    OHW = OH * OW
    HWin = Hin * Win
    HWP = _round_up(HWin, 128)                  # lane-dense K for the pooling matmul
    KC = OHW * C0                               # im2col contraction length for conv1 (5*5*128)
    NCP = _round_up(NC, 128)                    # lane-dense fc output, sliced back at the end
    TC1 = 256                                   # conv1 Cout tile (bounds per-step VMEM)
    assert C1 % TC1 == 0

    # ---- one-time layout glue: NCHW -> channels-last (N, H*W, Cin); nothing else on the hot path.
    x2 = jnp.transpose(x_nchw, (0, 2, 3, 1)).reshape(N, HWin, Cin).astype(jnp.float32)
    x2 = jnp.pad(x2, ((0, 0), (0, HWP - HWin), (0, 0)))
    P = _build_pool_matrix(Hin, Win, PK, PS, OH, OW, HWP)

    # ---- fold BatchNorm (running stats, eps=1e-3) into per-channel scale/bias (kept f32).
    s0 = (gamma0 / jnp.sqrt(var0 + eps)).astype(jnp.float32)
    b0 = (beta0 - mean0 * s0).astype(jnp.float32)
    s1 = (gamma1 / jnp.sqrt(var1 + eps)).astype(jnp.float32)
    b1 = (beta1 - mean1 * s1).astype(jnp.float32)
    s0, b0 = s0.reshape(1, C0), b0.reshape(1, C0)
    s1, b1 = s1.reshape(1, C1), b1.reshape(1, C1)

    # ---- bf16 MXU operands (f32 accumulation happens inside the kernels).
    w0_2d = jnp.transpose(w0_oihw[:, :, 0, 0], (1, 0)).astype(jnp.bfloat16)             # (Cin, C0)
    w1_2d = jnp.transpose(w1_oihw, (2, 3, 1, 0)).reshape(KC, C1).astype(jnp.bfloat16)   # (KC, C1)
    wfc_2d = jnp.zeros((C1, NCP), jnp.bfloat16).at[:, :NC].set(wfc.T.astype(jnp.bfloat16))
    bfc_2d = jnp.zeros((1, NCP), jnp.float32).at[0, :NC].set(bfc.astype(jnp.float32))

    # ===================== stage 1: avg_pool + conv0(1x1) + BN + ReLU =====================
    cost1 = pl.CostEstimate(
        flops=2 * N * OHW * (HWP * Cin + Cin * C0),
        transcendentals=0,
        bytes_accessed=(x2.size * 4 + P.size * 4 + w0_2d.size * 2
                        + (s0.size + b0.size) * 4 + N * OHW * C0 * 2))
    feat = pl.pallas_call(
        _pool_conv0_kernel,
        out_shape=jax.ShapeDtypeStruct((N, OHW, C0), jnp.bfloat16),
        grid_spec=pltpu.PrefetchScalarGridSpec(
            num_scalar_prefetch=0,
            grid=(N,),
            in_specs=[
                pl.BlockSpec((1, HWP, Cin), lambda n: (n, 0, 0)),
                pl.BlockSpec((OHW, HWP), lambda n: (0, 0)),
                pl.BlockSpec((Cin, C0), lambda n: (0, 0)),
                pl.BlockSpec((1, C0), lambda n: (0, 0)),
                pl.BlockSpec((1, C0), lambda n: (0, 0)),
            ],
            out_specs=pl.BlockSpec((1, OHW, C0), lambda n: (n, 0, 0)),
        ),
        compiler_params=pltpu.CompilerParams(
            dimension_semantics=("parallel",),
            vmem_limit_bytes=32 * 1024 * 1024),
        cost_estimate=cost1,
    )(x2, P, w0_2d, s0, b0)

    # im2col view for conv1: row layout (oh, ow, c) matches w1_2d's (kh, kw, cin) row order.
    feat2 = feat.reshape(N, 1, KC)

    # ============ stage 2: conv1(5x5 valid) + BN + ReLU + adaptive pool + fc ============
    cost2 = pl.CostEstimate(
        flops=2 * N * (KC * C1 + C1 * NCP),
        transcendentals=0,
        bytes_accessed=(feat2.size * 2 + w1_2d.size * 2 + (s1.size + b1.size) * 4
                        + wfc_2d.size * 2 + bfc_2d.size * 4 + N * NCP * 4))
    logits = pl.pallas_call(
        _conv1_fc_kernel,
        out_shape=jax.ShapeDtypeStruct((N, 1, NCP), jnp.float32),
        grid_spec=pltpu.PrefetchScalarGridSpec(
            num_scalar_prefetch=0,
            grid=(N, C1 // TC1),
            in_specs=[
                pl.BlockSpec((1, 1, KC), lambda n, j: (n, 0, 0)),
                pl.BlockSpec((KC, TC1), lambda n, j: (0, j)),
                pl.BlockSpec((1, TC1), lambda n, j: (0, j)),
                pl.BlockSpec((1, TC1), lambda n, j: (0, j)),
                pl.BlockSpec((TC1, NCP), lambda n, j: (j, 0)),
                pl.BlockSpec((1, NCP), lambda n, j: (0, 0)),
            ],
            out_specs=pl.BlockSpec((1, 1, NCP), lambda n, j: (n, 0, 0)),
            scratch_shapes=[pltpu.VMEM((1, NCP), jnp.float32)],
        ),
        compiler_params=pltpu.CompilerParams(
            dimension_semantics=("parallel", "arbitrary"),
            vmem_limit_bytes=32 * 1024 * 1024),
        cost_estimate=cost2,
    )(feat2, w1_2d, s1, b1, wfc_2d, bfc_2d)

    return logits.reshape(N, NCP)[:, :NC]


# --------------------------------------------------------------------------------------
# Pure-JAX reference (eval-mode BN)
# --------------------------------------------------------------------------------------
def _reference(x, w0, g0, be0, m0, v0, w1, g1, be1, m1, v1, wfc, bfc, *, eps=1e-3):
    def bn_relu(y, g, b, m, v):
        sc = g / jnp.sqrt(v + eps)
        bi = b - m * sc
        return jnp.maximum(y * sc.reshape(1, -1, 1, 1) + bi.reshape(1, -1, 1, 1), 0.0)

    y = lax.reduce_window(x, 0.0, lax.add, (1, 1, 5, 5), (1, 1, 3, 3), "VALID") / 25.0
    y = lax.conv_general_dilated(y, w0, (1, 1), "VALID",
                                 dimension_numbers=("NCHW", "OIHW", "NCHW"))
    y = bn_relu(y, g0, be0, m0, v0)
    y = lax.conv_general_dilated(y, w1, (1, 1), "VALID",
                                 dimension_numbers=("NCHW", "OIHW", "NCHW"))
    y = bn_relu(y, g1, be1, m1, v1)
    y = jnp.mean(y, axis=(2, 3))                       # AdaptiveAvgPool2d((1,1)) + flatten
    return y @ wfc.T + bfc


if __name__ == "__main__":
    key = jax.random.PRNGKey(0)
    ks = jax.random.split(key, 16)

    # Small shapes consistent with InceptionAux: 17x17 is the smallest spatial size for which
    # avg_pool(5,3) -> 5x5 -> conv1(5x5, valid) -> 1x1 is well defined. 128/768 are fixed by the module.
    N, Cin, Hin, Win = 2, 32, 17, 17
    num_classes = 10
    C0, C1, K1 = 128, 768, 5

    x = jax.random.normal(ks[0], (N, Cin, Hin, Win), jnp.float32)

    w0 = jax.random.normal(ks[1], (C0, Cin, 1, 1), jnp.float32) / jnp.sqrt(Cin)
    g0 = 1.0 + 0.1 * jax.random.normal(ks[2], (C0,), jnp.float32)
    be0 = 0.1 * jax.random.normal(ks[3], (C0,), jnp.float32)
    m0 = 0.1 * jax.random.normal(ks[4], (C0,), jnp.float32)
    v0 = jnp.abs(jax.random.normal(ks[5], (C0,), jnp.float32)) + 0.5

    w1 = jax.random.normal(ks[6], (C1, C0, K1, K1), jnp.float32) * 0.02
    g1 = 1.0 + 0.1 * jax.random.normal(ks[7], (C1,), jnp.float32)
    be1 = 0.1 * jax.random.normal(ks[8], (C1,), jnp.float32)
    m1 = 0.1 * jax.random.normal(ks[9], (C1,), jnp.float32)
    v1 = jnp.abs(jax.random.normal(ks[10], (C1,), jnp.float32)) + 0.5

    wfc = jax.random.normal(ks[11], (num_classes, C1), jnp.float32) * 0.05
    bfc = 0.1 * jax.random.normal(ks[12], (num_classes,), jnp.float32)

    out = inception_aux_forward(x, w0, g0, be0, m0, v0, w1, g1, be1, m1, v1, wfc, bfc)
    out = jax.block_until_ready(out)
    assert out.shape == (N, num_classes)

    # Reference uses the same bf16-rounded weights as the kernel (mixed-precision parity check).
    rb = lambda a: a.astype(jnp.bfloat16).astype(jnp.float32)
    ref = _reference(x, rb(w0), g0, be0, m0, v0, rb(w1), g1, be1, m1, v1, rb(wfc), bfc)

    err = float(jnp.max(jnp.abs(out - ref)))
    scale = float(jnp.max(jnp.abs(ref))) + 1e-6
    assert err <= 3e-2 * scale + 2e-3, f"mismatch vs reference: max_err={err:.4e} scale={scale:.4e}"

    print("KERNEL_OK")
</pallas_src>

<mosaic_0001>
module attributes {stable_mosaic.version = 11 : i64} {
  func.func @_pool_conv0_kernel(%arg0: i32, %arg1: memref<1x384x32xf32, #tpu.memory_space<vmem>>, %arg2: memref<25x384xf32, #tpu.memory_space<vmem>>, %arg3: memref<32x128xbf16, #tpu.memory_space<vmem>>, %arg4: memref<1x128xf32, #tpu.memory_space<vmem>>, %arg5: memref<1x128xf32, #tpu.memory_space<vmem>>, %arg6: memref<1x25x128xbf16, #tpu.memory_space<vmem>>) attributes {dimension_semantics = [#tpu.dimension_semantics<parallel>], iteration_bounds = array<i64: 2>, scalar_prefetch = 0 : i64, scratch_operands = 0 : i64, tpu.core_type = #tpu.core_type<tc>, window_params = [{transform_indices = @transform_0, window_bounds = array<i64: 1, 384, 32>}, {pipeline_mode = #tpu.pipeline_mode<synchronous>, transform_indices = @transform_1, window_bounds = array<i64: 25, 384>}, {pipeline_mode = #tpu.pipeline_mode<synchronous>, transform_indices = @transform_2, window_bounds = array<i64: 32, 128>}, {pipeline_mode = #tpu.pipeline_mode<synchronous>, transform_indices = @transform_3, window_bounds = array<i64: 1, 128>}, {pipeline_mode = #tpu.pipeline_mode<synchronous>, transform_indices = @transform_4, window_bounds = array<i64: 1, 128>}, {transform_indices = @transform_5, window_bounds = array<i64: 1, 25, 128>}]} {
    %c0 = arith.constant 0 : index
    %c0_0 = arith.constant 0 : index
    %0 = vector.load %arg2[%c0, %c0_0] : memref<25x384xf32, #tpu.memory_space<vmem>>, vector<25x384xf32>
    %c0_1 = arith.constant 0 : index
    %c0_2 = arith.constant 0 : index
    %c0_3 = arith.constant 0 : index
    %1 = vector.load %arg1[%c0_1, %c0_2, %c0_3] : memref<1x384x32xf32, #tpu.memory_space<vmem>>, vector<1x384x32xf32>
    %2 = vector.shape_cast %1 : vector<1x384x32xf32> to vector<384x32xf32>
    %cst = arith.constant dense<0.000000e+00> : vector<25x32xf32>
    %3 = tpu.matmul %0, %2, %cst {dimension_numbers = #tpu.dot_dimension_numbers<[1], [0], [0], [1], [0, 0, 1, 1], [], []>} : vector<25x384xf32>, vector<384x32xf32>, vector<25x32xf32> -> vector<25x32xf32>
    %4 = arith.truncf %3 : vector<25x32xf32> to vector<25x32xbf16>
    %c0_4 = arith.constant 0 : index
    %c0_5 = arith.constant 0 : index
    %5 = vector.load %arg3[%c0_4, %c0_5] : memref<32x128xbf16, #tpu.memory_space<vmem>>, vector<32x128xbf16>
    %cst_6 = arith.constant dense<0.000000e+00> : vector<25x128xf32>
    %6 = tpu.matmul %4, %5, %cst_6 {dimension_numbers = #tpu.dot_dimension_numbers<[1], [0], [0], [1], [0, 0, 1, 1], [], []>} : vector<25x32xbf16>, vector<32x128xbf16>, vector<25x128xf32> -> vector<25x128xf32>
    %c0_7 = arith.constant 0 : index
    %c0_8 = arith.constant 0 : index
    %7 = vector.load %arg4[%c0_7, %c0_8] : memref<1x128xf32, #tpu.memory_space<vmem>>, vector<1x128xf32>
    %8 = vector.shape_cast %7 : vector<1x128xf32> to vector<128xf32>
    %9 = vector.shape_cast %8 : vector<128xf32> to vector<1x128xf32>
    %10 = vector.broadcast %9 : vector<1x128xf32> to vector<25x128xf32>
    %11 = arith.mulf %6, %10 : vector<25x128xf32>
    %c0_9 = arith.constant 0 : index
    %c0_10 = arith.constant 0 : index
    %12 = vector.load %arg5[%c0_9, %c0_10] : memref<1x128xf32, #tpu.memory_space<vmem>>, vector<1x128xf32>
    %13 = vector.shape_cast %12 : vector<1x128xf32> to vector<128xf32>
    %14 = vector.shape_cast %13 : vector<128xf32> to vector<1x128xf32>
    %15 = vector.broadcast %14 : vector<1x128xf32> to vector<25x128xf32>
    %16 = arith.addf %11, %15 : vector<25x128xf32>
    %cst_11 = arith.constant 0.000000e+00 : f32
    %17 = vector.broadcast %cst_11 : f32 to vector<25x128xf32>
    %18 = arith.maximumf %16, %17 : vector<25x128xf32>
    %19 = arith.truncf %18 : vector<25x128xf32> to vector<25x128xbf16>
    %c0_12 = arith.constant 0 : index
    %c0_13 = arith.constant 0 : index
    %c0_14 = arith.constant 0 : index
    %20 = vector.load %arg6[%c0_12, %c0_13, %c0_14] : memref<1x25x128xbf16, #tpu.memory_space<vmem>>, vector<1x25x128xbf16>
    %21 = vector.shape_cast %20 : vector<1x25x128xbf16> to vector<25x128xbf16>
    %22 = vector.shape_cast %19 : vector<25x128xbf16> to vector<1x25x128xbf16>
    tpu.vector_store %arg6[%c0_12, %c0_13, %c0_14], %22 {strides = array<i32>} : memref<1x25x128xbf16, #tpu.memory_space<vmem>>, vector<1x25x128xbf16>,
    return
  }
  func.func @transform_0(%arg0: i32) -> (i32, i32, i32) {
    %c0_i32 = arith.constant 0 : i32
    %c0_i32_0 = arith.constant 0 : i32
    %c0_i32_1 = arith.constant 0 : i32
    return %arg0, %c0_i32, %c0_i32_0 : i32, i32, i32
  }
  func.func @transform_1(%arg0: i32) -> (i32, i32) {
    %c0_i32 = arith.constant 0 : i32
    %c0_i32_0 = arith.constant 0 : i32
    %c0_i32_1 = arith.constant 0 : i32
    return %c0_i32, %c0_i32_0 : i32, i32
  }
  func.func @transform_2(%arg0: i32) -> (i32, i32) {
    %c0_i32 = arith.constant 0 : i32
    %c0_i32_0 = arith.constant 0 : i32
    %c0_i32_1 = arith.constant 0 : i32
    return %c0_i32, %c0_i32_0 : i32, i32
  }
  func.func @transform_3(%arg0: i32) -> (i32, i32) {
    %c0_i32 = arith.constant 0 : i32
    %c0_i32_0 = arith.constant 0 : i32
    %c0_i32_1 = arith.constant 0 : i32
    return %c0_i32, %c0_i32_0 : i32, i32
  }
  func.func @transform_4(%arg0: i32) -> (i32, i32) {
    %c0_i32 = arith.constant 0 : i32
    %c0_i32_0 = arith.constant 0 : i32
    %c0_i32_1 = arith.constant 0 : i32
    return %c0_i32, %c0_i32_0 : i32, i32
  }
  func.func @transform_5(%arg0: i32) -> (i32, i32, i32) {
    %c0_i32 = arith.constant 0 : i32
    %c0_i32_0 = arith.constant 0 : i32
    %c0_i32_1 = arith.constant 0 : i32
    return %arg0, %c0_i32, %c0_i32_0 : i32, i32, i32
  }
}

</mosaic_0001>

<bundles_post_ra>
// kernel: tpu_custom_call.1
= control target key start
LH: loop header
LB: loop body
LE: loop exit
PB: predicated region body
PF: predicated region fallthrough
CT: control target
= control target key end

     0   :  { %s893_s18 = smov 0   ;;  %s1012_s0 = inlined_call_operand.vmem [shape: f32[2,384,32], index: 0, kind: input, shape index: {}]   ;;  %s1013_s1 = inlined_call_operand.vmem [shape: f32[25,384], index: 1, kind: input, shape index: {}]   ;;  %s1014_s2 = inlined_call_operand.vmem [shape: bf16[32,128], index: 2, kind: input, shape index: {}]   ;;  %s1015_s3 = inlined_call_operand.vmem [shape: f32[1,128], index: 3, kind: input, shape index: {}]   ;;  %s1016_s4 = inlined_call_operand.vmem [shape: f32[1,128], index: 4, kind: input, shape index: {}]   ;;  %s1017_s5 = inlined_call_operand.vmem [shape: bf16[2,25,128], index: 5, kind: output, shape index: {}]  }
   0x1 LB: > { %s636_s19 = sadd.s32 4294967295, %s861_s18   ;;  %p640_p0 = scmp.ge.s32.totalorder %s861_s18, 1  ;;  %s861_s18 = sphi %s893_s18, %s15_s18  }
   0x2   : > { %p187_p1 = scmp.lt.s32.totalorder %s861_s18, 3 }
   0x4   : > { %p188_p2 = pnand %p640_p0, %p187_p1 }
   0x5   : > { %p215_p3 = scmp.lt.s32.totalorder (!%p188_p2), %s636_s19, 1  ;;  %v227_v0 = vld [vmem:[%s1013_s1 + $0x8] sm:$0xff] (!%p188_p2)  ;;  %v228_v1 = vld [vmem:[%s1013_s1 + $0x10] sm:$0xff] (!%p188_p2)  ;;  %vm474_vm0 = vcmask (!%p188_p2), 261120   ;;  %vm575_vm1 = vcmask (!%p188_p2), 1040384  }
   0x6   : > { %191 = sbr.rel (%p188_p2) target bundleno = 507 (0x1fb), region = 40  ;;  %350 = vmatprep.mubr.f32.mxu0 (!%p188_p2), %v227_v0  ;;  %766 = vmatprep.mubr.f32.mxu1 (!%p188_p2), %v228_v1  ;;  %vm576_vm2 = vsmask.f32 (!%p188_p2), 256 }
   0x7   : > { %vm577_vm3 = vmand (!%p188_p2), %vm575_vm1, %vm576_vm2 }
   0xd   : > { %s1019_s19 = smov (!%p215_p3, %s636_s19), 1 }
   0xe   : > { %s844_s24 = smul.u32 384, %s1019_s19  ;;  %s656_s8 = sshll.u32 %s1019_s19, 4 }
   0xf   : > { %s224_s11 = scalar_lea.vmem %s1017_s5, %s656_s8 }
  0x10   : > { %s913_s27 = scalar_lea.vmem %s1012_s0, %s844_s24 }
  0x11   : > { %v254_v2 = vld [vmem:[%s913_s27 + $0x80] sm:$0xff]  ;;  %v255_v3 = vld [vmem:[%s913_s27 + $0x88] sm:$0xff]  ;;  %v256_v11 = vld [vmem:[%s913_s27 + $0x90] sm:$0xff] }
  0x12   : > { %v238_v4 = vld [vmem:[%s913_s27] sm:$0xff]  ;;  %v780_v5 = vpack.c.bf16 %v255_v3, %v254_v2  ;;  %v239_v6 = vld [vmem:[%s913_s27 + $0x8] sm:$0xff]  ;;  %v257_v12 = vld [vmem:[%s913_s27 + $0x98] sm:$0xff] }
  0x13   : > { %v270_v7 = vld [vmem:[%s913_s27 + $0x100] sm:$0xff]  ;;  %v271_v8 = vld [vmem:[%s913_s27 + $0x108] sm:$0xff]  ;;  %v782_v9 = vpack.c.bf16 %v239_v6, %v238_v4  ;;  %v240_v13 = vld [vmem:[%s913_s27 + $0x10] sm:$0xff]  ;;  %v784_v14 = vpack.c.bf16 %v257_v12, %v256_v11 }
  0x14   : > { %v812_v10 = vpack.c.bf16 %v271_v8, %v270_v7  ;;  %781 = vmatprep.subr.bf16.mxu0 %v780_v5  ;;  %v241_v15 = vld [vmem:[%s913_s27 + $0x18] sm:$0xff]  ;;  %v272_v16 = vld [vmem:[%s913_s27 + $0x110] sm:$0xff]  ;;  %v258_v20 = vld [vmem:[%s913_s27 + $0xa0] sm:$0xff] }
  0x15   : > { %v273_v17 = vld [vmem:[%s913_s27 + $0x118] sm:$0xff]  ;;  %783 = vmatpush3.bf16.msra.mxu0 %v782_v9  ;;  %v786_v18 = vpack.c.bf16 %v241_v15, %v240_v13  ;;  %v259_v21 = vld [vmem:[%s913_s27 + $0xa8] sm:$0xff]  ;;  %v242_v22 = vld [vmem:[%s913_s27 + $0x20] sm:$0xff] }
  0x16   : > { %813 = vmatprep.subr.bf16.mxu1 %v812_v10  ;;  %v816_v19 = vpack.c.bf16 %v273_v17, %v272_v16  ;;  %785 = vmatprep.subr.bf16.mxu0 %v784_v14  ;;  %v788_v23 = vpack.c.bf16 %v259_v21, %v258_v20  ;;  %v243_v24 = vld [vmem:[%s913_s27 + $0x28] sm:$0xff]  ;;  %v274_v25 = vld [vmem:[%s913_s27 + $0x120] sm:$0xff]  ;;  %v260_v28 = vld [vmem:[%s913_s27 + $0xb0] sm:$0xff] }
  0x17   : > { %815 = vmatpush3.bf16.msra.mxu1 %v812_v10  ;;  %v275_v26 = vld [vmem:[%s913_s27 + $0x128] sm:$0xff]  ;;  %v261_v29 = vld [vmem:[%s913_s27 + $0xb8] sm:$0xff]  ;;  %v276_v30 = vld [vmem:[%s913_s27 + $0x130] sm:$0xff]  ;;  %v790_v32 = vpack.c.bf16 %v243_v24, %v242_v22 }
  0x18   : > { %817 = vmatprep.subr.bf16.mxu1 %v816_v19  ;;  %v820_v27 = vpack.c.bf16 %v275_v26, %v274_v25  ;;  %v277_v31 = vld [vmem:[%s913_s27 + $0x138] sm:$0xff]  ;;  %v792_v33 = vpack.c.bf16 %v261_v29, %v260_v28  ;;  %v244_v34 = vld [vmem:[%s913_s27 + $0x30] sm:$0xff]  ;;  %v262_v37 = vld [vmem:[%s913_s27 + $0xc0] sm:$0xff] }
  0x19   : > { %787 = vmatpush3.bf16.msra.mxu0 %v786_v18  ;;  %v245_v35 = vld [vmem:[%s913_s27 + $0x38] sm:$0xff]  ;;  %v824_v36 = vpack.c.bf16 %v277_v31, %v276_v30  ;;  %v263_v38 = vld [vmem:[%s913_s27 + $0xc8] sm:$0xff]  ;;  %v278_v39 = vld [vmem:[%s913_s27 + $0x140] sm:$0xff] }
  0x1a   : > { %789 = vmatprep.subr.bf16.mxu0 %v788_v23  ;;  %v279_v40 = vld [vmem:[%s913_s27 + $0x148] sm:$0xff]  ;;  %v794_v41 = vpack.c.bf16 %v245_v35, %v244_v34  ;;  %v796_v42 = vpack.c.bf16 %v263_v38, %v262_v37  ;;  %v246_v43 = vld [vmem:[%s913_s27 + $0x40] sm:$0xff]  ;;  %v264_v46 = vld [vmem:[%s913_s27 + $0xd0] sm:$0xff] }
  0x1b   : > { %819 = vmatpush3.bf16.msra.mxu1 %v816_v19  ;;  %v247_v44 = vld [vmem:[%s913_s27 + $0x48] sm:$0xff]  ;;  %v828_v45 = vpack.c.bf16 %v279_v40, %v278_v39  ;;  %v265_v47 = vld [vmem:[%s913_s27 + $0xd8] sm:$0xff]  ;;  %v280_v48 = vld [vmem:[%s913_s27 + $0x150] sm:$0xff] }
  0x1c   : > { %821 = vmatprep.subr.bf16.mxu1 %v820_v27  ;;  %v281_v49 = vld [vmem:[%s913_s27 + $0x158] sm:$0xff]  ;;  %v798_v50 = vpack.c.bf16 %v247_v44, %v246_v43  ;;  %v800_v51 = vpack.c.bf16 %v265_v47, %v264_v46  ;;  %v248_v52 = vld [vmem:[%s913_s27 + $0x50] sm:$0xff]  ;;  %v266_v55 = vld [vmem:[%s913_s27 + $0xe0] sm:$0xff] }
  0x1d   : > { %791 = vmatpush3.bf16.msra.mxu0 %v790_v32  ;;  %v249_v53 = vld [vmem:[%s913_s27 + $0x58] sm:$0xff]  ;;  %v832_v54 = vpack.c.bf16 %v281_v49, %v280_v48  ;;  %v267_v56 = vld [vmem:[%s913_s27 + $0xe8] sm:$0xff]  ;;  %v282_v57 = vld [vmem:[%s913_s27 + $0x160] sm:$0xff] }
  0x1e   : > { %793 = vmatprep.subr.bf16.mxu0 %v792_v33  ;;  %v283_v58 = vld [vmem:[%s913_s27 + $0x168] sm:$0xff]  ;;  %v802_v59 = vpack.c.bf16 %v249_v53, %v248_v52  ;;  %v804_v60 = vpack.c.bf16 %v267_v56, %v266_v55  ;;  %v250_v61 = vld [vmem:[%s913_s27 + $0x60] sm:$0xff]  ;;  %v268_v0 = vld [vmem:[%s913_s27 + $0xf0] sm:$0xff] }
  0x1f   : > { %823 = vmatpush3.bf16.msra.mxu1 %v820_v27  ;;  %v251_v62 = vld [vmem:[%s913_s27 + $0x68] sm:$0xff]  ;;  %v836_v63 = vpack.c.bf16 %v283_v58, %v282_v57  ;;  %v269_v1 = vld [vmem:[%s913_s27 + $0xf8] sm:$0xff]  ;;  %v284_v2 = vld [vmem:[%s913_s27 + $0x170] sm:$0xff] }
  0x20   : > { %825 = vmatprep.subr.bf16.mxu1 %v824_v36  ;;  %v285_v3 = vld [vmem:[%s913_s27 + $0x178] sm:$0xff]  ;;  %v806_v4 = vpack.c.bf16 %v251_v62, %v250_v61  ;;  %v808_v5 = vpack.c.bf16 %v269_v1, %v268_v0  ;;  %v252_v6 = vld [vmem:[%s913_s27 + $0x70] sm:$0xff]  ;;  %v226_v10 = vld [vmem:[%s1013_s1] sm:$0xff] }
  0x21   : > { %795 = vmatpush3.bf16.msra.mxu0 %v794_v41  ;;  %v253_v7 = vld [vmem:[%s913_s27 + $0x78] sm:$0xff]  ;;  %v840_v8 = vpack.c.bf16 %v285_v3, %v284_v2  ;;  %v231_v11 = vld [vmem:[%s1013_s1 + $0x28] sm:$0xff]  ;;  %v230_v12 = vld [vmem:[%s1013_s1 + $0x20] sm:$0xff] }
  0x22   : > { %797 = vmatprep.subr.bf16.mxu0 %v796_v42  ;;  %v810_v9 = vpack.c.bf16 %v253_v7, %v252_v6  ;;  %v234_v13 = vld [vmem:[%s1013_s1 + $0x40] sm:$0xff]  ;;  %v229_v14 = vld [vmem:[%s1013_s1 + $0x18] sm:$0xff]  ;;  %v232_v17 = vld [vmem:[%s1013_s1 + $0x30] sm:$0xff] }
  0x23   : > { %827 = vmatpush3.bf16.msra.mxu1 %v824_v36  ;;  %v233_v15 = vld [vmem:[%s1013_s1 + $0x38] sm:$0xff]  ;;  %v236_v18 = vld [vmem:[%s1013_s1 + $0x50] sm:$0x1]  ;;  %v235_v19 = vld [vmem:[%s1013_s1 + $0x48] sm:$0x1] }
  0x24   : > { %829 = vmatprep.subr.bf16.mxu1 %v828_v45  ;;  %v237_v16 = vld [vmem:[%s1013_s1 + $0x58] sm:$0x1]  ;;  %v853_v20 = vld [vmem:[%s1014_s2] sm:$0xff]   ;;  %v854_v21 = vld [vmem:[%s1014_s2 + $0x8] sm:$0xff]  }
  0x25   : > { %799 = vmatpush3.bf16.msra.mxu0 %v798_v50  ;;  %v648_v44 = vld [vmem:[%s1015_s3] ss:$0 sm:$0xff]  ;;  %v578_v62 = vld [vmem:[%s224_s11 + $0xc] sm:$0x1] }
  0x26   : > { %801 = vmatprep.subr.bf16.mxu0 %v800_v51  ;;  %v649_v46 = vld [vmem:[%s1016_s4] ss:$0 sm:$0xff] }
  0x27   : > { %831 = vmatpush3.bf16.msra.mxu1 %v828_v45 }
  0x28   : > { %833 = vmatprep.subr.bf16.mxu1 %v832_v54 }
  0x29   : > { %803 = vmatpush3.bf16.msra.mxu0 %v802_v59 }
  0x2a   : > { %805 = vmatprep.subr.bf16.mxu0 %v804_v60 }
  0x2b   : > { %835 = vmatpush3.bf16.msra.mxu1 %v832_v54 }
  0x2c   : > { %837 = vmatprep.subr.bf16.mxu1 %v836_v63 }
  0x2d   : > { %807 = vmatpush3.bf16.msra.mxu0 %v806_v4 }
  0x2e   : > { %809 = vmatprep.subr.bf16.mxu0 %v808_v5 }
  0x2f   : > { %839 = vmatpush3.bf16.msra.mxu1 %v836_v63 }
  0x30   : > { %841 = vmatprep.subr.bf16.mxu1 %v840_v8 }
  0x31   : > { %811 = vmatpush3.bf16.msra.mxu0 %v810_v9 }
  0x33   : > { %843 = vmatpush3.bf16.msra.mxu1 %v840_v8 }
  0x34   : > { %351 = vmatmul.mubr.f32.vlgmr.msra.gmra.mrb[0].mxu0 %v226_v10  ;;  %772 = vmatprep.subr.bf16.mxu1 %v853_v20 }
  0x35   : > { %355 = vmatprep.mubr.f32.mxu0 %v230_v12 }
  0x36   : > { %767 = vmatmul.mubr.f32.vlgmr.msra.gmra.mrb[0].mxu1 %v231_v11 }
  0x37   : > { %769 = vmatprep.mubr.f32.mxu1 %v234_v13  ;;  %773 = vmatpush3.bf16.msra.mxu1 %v853_v20 }
  0x38   : > { %356 = vmatmul.mubr.f32.gmra.mrb[2].mxu0 %v229_v14  ;;  %774 = vmatprep.subr.bf16.mxu1 %v854_v21 }
  0x39   : > { %360 = vmatprep.mubr.f32.mxu0 %v233_v15 }
  0x3a   : > { %770 = vmatmul.mubr.f32.gmra.mrb[2].mxu1 %v237_v16 }
  0x3b   : > { %775 = vmatpush3.bf16.msra.mxu1 %v854_v21 }
  0x3c   : > { %361 = vmatmul.mubr.f32.gmra.mrb[4].mxu0 %v232_v17 }
  0x3d   : > { %365 = vmatprep.mubr.f32.mxu0 %v236_v18 }
  0x40   : > { %366 = vmatmul.mubr.f32.gmra.mrb[6].mxu0 %v235_v19 }
 0x107   : > { %v698_v22 = vpop.f32.mrb[0].mxu0 }
 0x108   : > { %v699_v23 = vpop.f32.mrb[1].mxu0 }
 0x109   : > { %v768_v24 = vpop.f32.mrb[0].mxu1  ;;  %v700_v25 = vadd.f32 %v699_v23, %v698_v22 }
 0x10a   : > { %v437_v26 = vpop.f32.mrb[1].mxu1 }
 0x10b   : > { %v438_v27 = vadd.f32 %v700_v25, %v437_v26  ;;  %v701_v28 = vpop.f32.mrb[2].mxu0 }
 0x10c   : > { %v702_v29 = vpop.f32.mrb[3].mxu0 }
 0x10d   : > { %v771_v30 = vpop.f32.mrb[2].mxu1  ;;  %v703_v31 = vadd.f32 %v702_v29, %v701_v28 }
 0x10e   : > { %v447_v32 = vpop.f32.mrb[3].mxu1 }
 0x10f   : > { %v443_v33 = vadd.f32 %v768_v24, %v703_v31  ;;  %v704_v34 = vpop.f32.mrb[4].mxu0 }
 0x110   : > { %v705_v35 = vpop.f32.mrb[5].mxu0 }
 0x111   : > { %v456_v36 = vpack.c.bf16 %v443_v33, %v438_v27  ;;  %v706_v37 = vadd.f32 %v705_v35, %v704_v34 }
 0x113   : > { %v448_v38 = vadd.f32 %v706_v37, %v447_v32  ;;  %v707_v39 = vpop.f32.mrb[6].mxu0  ;;  %776 = vmatprep.mubr.msk.bf16.mxu1 %vm474_vm0, %v456_v36 }
 0x114   : > { %v708_v40 = vpop.f32.mrb[7].mxu0 }
 0x115   : > { %v709_v41 = vadd.f32 %v708_v40, %v707_v39 }
 0x117   : > { %v453_v42 = vadd.f32 %v771_v30, %v709_v41 }
 0x119   : > { %v457_v43 = vpack.c.bf16 %v453_v42, %v448_v38 }
 0x11b   : > { %777 = vmatmul.mubr.msk.bf16.vlgmr.msra.gmra.mrb[4].mxu1 %vm474_vm0, %v457_v43 }
 0x1ee   : > { %v778_v45 = vpop.f32.mrb[4].mxu1 }
 0x1ef   : > { %v539_v47 = vmul.f32 %v778_v45, %v648_v44  ;;  %v515_v48 = vpop.f32.mrb[5].mxu1 }
 0x1f0   : > { %v537_v49 = vmul.f32 %v648_v44, %v515_v48  ;;  %v779_v50 = vpop.f32.mrb[6].mxu1 }
 0x1f1   : > { %v550_v51 = vadd.f32 %v649_v46, %v539_v47  ;;  %v540_v52 = vmul.f32 %v779_v50, %v648_v44  ;;  %v518_v53 = vpop.f32.mrb[7].mxu1 }
 0x1f2   : > { %v548_v54 = vadd.f32 %v649_v46, %v537_v49  ;;  %v538_v55 = vmul.f32 %v648_v44, %v518_v53 }
 0x1f3   : > { %v554_v56 = vmax.f32 %v550_v51, 0.0  ;;  %v551_v57 = vadd.f32 %v649_v46, %v540_v52 }
 0x1f4   : > { %v549_v58 = vadd.f32 %v649_v46, %v538_v55  ;;  %v552_v61 = vmax.f32 %v548_v54, 0.0 }
 0x1f5   : > { %v659_v59 = vpack.c.bf16 %v554_v56, %v554_v56  ;;  %v555_v60 = vmax.f32 %v551_v57, 0.0 }
 0x1f6   : > { %v553_v63 = vmax.f32 %v549_v58, 0.0 }
 0x1f7   : > { %574 = vst [vmem:[%s224_s11 + $0x8] sm:$0xf] %v659_v59  ;;  %v660_v0 = vpack.c.bf16 %v555_v60, %v555_v60 }
 0x1f8   : > { %v664_v1 = vpack.c.bf16 %v553_v63, %v552_v61 }
 0x1f9   : > { %v579_v2 = vsel %vm577_vm3, %v660_v0, %v578_v62 }
 0x1fa   : > { %580 = vst [vmem:[%s224_s11 + $0xc] sm:$0x1] %v579_v2  ;;  %665 = vst [vmem:[%s224_s11] sm:$0xff] %v664_v1  }
 0x1fb PF: > { %s15_s18 = sadd.s32 1, %s861_s18  }
 0x1fc   : > { %p12_p4 = scmp.ge.s32.totalorder %s15_s18, 4  }
 0x1fe   :  { %14 = sbr.rel (!%p12_p4) target bundleno = 1 (0x1), region = 70 }

</bundles_post_ra>
